<compile_context>
chip_gen: v5e
topology: v5e:2x2
jax: 0.10.0
libtpu: 0.0.40
codegen_flags: <defaults>
</compile_context>

<pallas_src>
import jax
import jax.numpy as jnp
from jax.experimental import pallas as pl
from jax.experimental.pallas import tpu as pltpu

_LANES = 128
_SUBLANES = 8
_TILE_BYTES = 4 * 1024 * 1024   # ~4 MiB/tile; x2 arrays x2 buffers ≈ 16 MiB VMEM
_MIN_ROW_STEPS = 4              # keep >=4 grid steps so v7x megacore shards work


def _round_up(x, m):
    return -(-x // m) * m


def _pick_tiles(rows, cols, itemsize):
    """Static tile sizes for a (rows, cols) slab. Returns (row_tile, col_tile)."""
    # Column tile: the whole trailing dim when an 8-row slab of it fits the
    # budget (or it's already <=128), otherwise a 128-multiple chunk; Pallas
    # masks the ragged trailing block.
    if cols <= _LANES or cols * itemsize * _SUBLANES <= _TILE_BYTES:
        col_t = cols
    else:
        col_t = max(_LANES,
                    (_TILE_BYTES // (_SUBLANES * itemsize)) // _LANES * _LANES)
    # Row tile: fill the byte budget (multiple of 8 sublanes, or the full dim),
    # but keep at least _MIN_ROW_STEPS grid steps for megacore sharding.
    if rows <= _SUBLANES:
        row_t = rows
    else:
        fit = max(_SUBLANES,
                  (_TILE_BYTES // max(1, col_t * itemsize))
                  // _SUBLANES * _SUBLANES)
        want = _round_up(pl.cdiv(rows, _MIN_ROW_STEPS), _SUBLANES)
        row_t = max(_SUBLANES, min(fit, want))
    return row_t, col_t


def _gaussian_kernel(scale_ref, x_ref, o_ref):
    # scale_ref: (1, 1) precomputed -1/(2 a^2) in SMEM.
    # x_ref / o_ref: (row_tile, col_tile) tiles in VMEM.
    scale = scale_ref[0, 0]
    x = x_ref[...].astype(jnp.float32)          # in-vreg cast; HBM stays native
    o_ref[...] = jnp.exp(x * x * scale).astype(o_ref.dtype)


def _gaussian_2d(x2d, scale_smem, out_dtype):
    rows, cols = x2d.shape
    itemsize = x2d.dtype.itemsize
    row_t, col_t = _pick_tiles(rows, cols, itemsize)
    grid = (pl.cdiv(rows, row_t), pl.cdiv(cols, col_t))
    n = rows * cols
    return pl.pallas_call(
        _gaussian_kernel,
        out_shape=jax.ShapeDtypeStruct((rows, cols), out_dtype),
        grid_spec=pltpu.PrefetchScalarGridSpec(
            num_scalar_prefetch=0,
            grid=grid,
            in_specs=[
                pl.BlockSpec(memory_space=pltpu.SMEM),               # scale
                pl.BlockSpec((row_t, col_t), lambda i, j: (i, j)),   # x tile
            ],
            out_specs=pl.BlockSpec((row_t, col_t), lambda i, j: (i, j)),
        ),
        compiler_params=pltpu.CompilerParams(
            dimension_semantics=("parallel", "parallel"),
            vmem_limit_bytes=32 * 1024 * 1024,
        ),
        cost_estimate=pl.CostEstimate(
            flops=2 * n,
            transcendentals=n,
            bytes_accessed=2 * n * itemsize,
        ),
    )(scale_smem, x2d)


def gaussian_activation(x, a):
    """Elementwise exp(-x^2 / (2 a^2)) via a Pallas TPU kernel.

    x: arbitrary-shape float array (e.g. NCHW), any float dtype.
    a: scalar parameter (shape (1,), like the PyTorch nn.Parameter).
    """
    orig_shape = x.shape
    orig_dtype = x.dtype
    n = int(x.size)
    if n == 0:
        return x

    # Precompute scale = -1/(2 a^2) once (scalar op); kernel never divides.
    # Note: a -> 0 gives -inf scale and 0/NaN outputs, matching the reference.
    a_scalar = jnp.asarray(a, dtype=jnp.float32).reshape(-1)[0]
    scale_smem = (-0.5 / (a_scalar * a_scalar)).reshape(1, 1)

    if n % _LANES == 0:
        # Perfectly lane-dense, free reshape of contiguous data.
        x2d = x.reshape(n // _LANES, _LANES)
    else:
        # Misaligned total size: avoid pad/slice HBM round trips by merging
        # trailing dims (free contiguous reshape) until the row length is
        # >= 128 (or all dims are merged); Pallas masks the ragged edges.
        t = 1
        k = x.ndim
        while k > 0 and t < _LANES:
            k -= 1
            t *= int(orig_shape[k])
        x2d = x.reshape(n // t, t)

    out2d = _gaussian_2d(x2d, scale_smem, orig_dtype)
    return out2d.reshape(orig_shape)


if __name__ == "__main__":
    key = jax.random.PRNGKey(0)
    # NCHW input like a conv feature map: batch=2, channels=4, spatial=16x16
    x = jax.random.normal(key, (2, 4, 16, 16), dtype=jnp.float32)

    # Deterministic parameter init: a = 1.0 * ones(1)  (matches module __init__)
    a = jnp.ones((1,), dtype=jnp.float32)

    y = jax.block_until_ready(gaussian_activation(x, a))
    y_ref = jnp.exp(-(x ** 2) / (2.0 * a[0] ** 2))
    assert y.shape == x.shape and y.dtype == x.dtype
    assert jnp.allclose(y, y_ref, atol=1e-6, rtol=1e-6)

    # Also exercise the misaligned (n % 128 != 0) path once: no pad/slice.
    x2 = jax.random.normal(jax.random.PRNGKey(1), (2, 4, 9, 9), dtype=jnp.float32)
    y2 = jax.block_until_ready(gaussian_activation(x2, a))
    y2_ref = jnp.exp(-(x2 ** 2) / (2.0 * a[0] ** 2))
    assert y2.shape == x2.shape and y2.dtype == x2.dtype
    assert jnp.allclose(y2, y2_ref, atol=1e-6, rtol=1e-6)

    print("KERNEL_OK")
</pallas_src>

<mosaic_0001>
module attributes {stable_mosaic.version = 11 : i64} {
  func.func @_gaussian_kernel(%arg0: i32, %arg1: i32, %arg2: memref<1x1xf32, #tpu.memory_space<smem>>, %arg3: memref<8x128xf32, #tpu.memory_space<vmem>>, %arg4: memref<8x128xf32, #tpu.memory_space<vmem>>) attributes {dimension_semantics = [#tpu.dimension_semantics<parallel>, #tpu.dimension_semantics<parallel>], iteration_bounds = array<i64: 2, 1>, scalar_prefetch = 0 : i64, scratch_operands = 0 : i64, tpu.core_type = #tpu.core_type<tc>, window_params = [{transform_indices = @transform_0, window_bounds = array<i64: 1, 1>}, {transform_indices = @transform_1, window_bounds = array<i64: 8, 128>}, {transform_indices = @transform_2, window_bounds = array<i64: 8, 128>}]} {
    %c0 = arith.constant 0 : index
    %c0_0 = arith.constant 0 : index
    %0 = memref.load %arg2[%c0, %c0_0] : memref<1x1xf32, #tpu.memory_space<smem>>
    %c0_1 = arith.constant 0 : index
    %c0_2 = arith.constant 0 : index
    %1 = vector.load %arg3[%c0_1, %c0_2] : memref<8x128xf32, #tpu.memory_space<vmem>>, vector<8x128xf32>
    %2 = arith.mulf %1, %1 : vector<8x128xf32>
    %3 = vector.broadcast %0 : f32 to vector<8x128xf32>
    %4 = arith.mulf %2, %3 : vector<8x128xf32>
    %5 = math.exp %4 : vector<8x128xf32>
    %c0_3 = arith.constant 0 : index
    %c0_4 = arith.constant 0 : index
    %6 = vector.load %arg4[%c0_3, %c0_4] : memref<8x128xf32, #tpu.memory_space<vmem>>, vector<8x128xf32>
    tpu.vector_store %arg4[%c0_3, %c0_4], %5 {strides = array<i32>} : memref<8x128xf32, #tpu.memory_space<vmem>>, vector<8x128xf32>,
    return
  }
  func.func @transform_0(%arg0: i32, %arg1: i32) -> (i32, i32) {
    %c0_i32 = arith.constant 0 : i32
    %c0_i32_0 = arith.constant 0 : i32
    %c0_i32_1 = arith.constant 0 : i32
    return %c0_i32, %c0_i32_0 : i32, i32
  }
  func.func @transform_1(%arg0: i32, %arg1: i32) -> (i32, i32) {
    %c0_i32 = arith.constant 0 : i32
    return %arg0, %arg1 : i32, i32
  }
  func.func @transform_2(%arg0: i32, %arg1: i32) -> (i32, i32) {
    %c0_i32 = arith.constant 0 : i32
    return %arg0, %arg1 : i32, i32
  }
}

</mosaic_0001>

<bundles_post_ra>
// kernel: tpu_custom_call.1
= control target key start
LH: loop header
LB: loop body
LE: loop exit
PB: predicated region body
PF: predicated region fallthrough
CT: control target
= control target key end

     0   :  { %s613_s0 = inlined_call_operand.<no memory space> [shape: f32[1,1], index: 0, kind: input, shape index: {}]   ;;  %s614_s1 = inlined_call_operand.hbm [shape: f32[16,128], index: 1, kind: input, shape index: {}]   ;;  %s615_s2 = inlined_call_operand.hbm [shape: f32[16,128], index: 2, kind: output, shape index: {}]  }
   0x1   :  { %7 = sst [smem:[#allocation2]] %s613_s0 }
   0x2   :  { %8 = vsyncpa [#allocation4], 0 }
   0x3   :  { %10 = vsyncpa [#allocation4 + $0x1], 0 }
   0x4   :  { %11 = vsyncpa [#allocation5], 0 }
   0x5   :  { %13 = vsyncpa [#allocation5 + $0x1], 0  ;;  %s493_s11 = smov 0   ;;  %s495_s12 = smov 0  }
   0x6   :  { %s497_s13 = smov 0   ;;  %s499_s14 = smov 0  }
   0x7   :  { %s501_s15 = smov 0   ;;  %s503_s16 = smov 0  }
   0x8 LB: > { %s284_s0 = sadd.s32 4294967295, %s473_s16   ;;  %s285_s17 = sadd.s32 4294967294, %s473_s16   ;;  %s473_s16 = sphi %s503_s16, %s19_s16   ;;  %s469_s15 = sphi %s501_s15, %s624_s15   ;;  %s465_s14 = sphi %s499_s14, %s623_s14   ;;  %s461_s13 = sphi %s497_s13, %s622_s13   ;;  %s457_s12 = sphi %s495_s12, %s621_s12   ;;  %s453_s11 = sphi %s493_s11, %s620_s11  }
   0x9   : > { %s31_s18 = sadd.s32 1, %s469_s15  ;;  %s61_s19 = sadd.s32 1, %s461_s13 }
   0xa   : > { %p33_p0 = scmp.ge.s32.totalorder %s31_s18, 2  ;;  %p68_p1 = scmp.ne.s32.totalorder %s461_s13, %s457_s12 }
   0xb   : > { %p69_p2 = scmp.eq.s32.totalorder %s473_s16, 0  ;;  %p74_p3 = scmp.ne.s32.totalorder %s457_s12, %s453_s11 }
   0xc   : > { %s626_s18 = smov (%p33_p0, %s31_s18), 0  ;;  %p75_p5 = scmp.eq.s32.totalorder %s284_s0, 0 }
   0xd   : > { %p534_p4 = por %p69_p2, %p68_p1  ;;  %s56_s21 = ssub.s32 %s469_s15, %s626_s18 }
   0xe   : > { %p100_p6 = scmp.eq.s32.totalorder %s284_s0, 1  ;;  %p59_p7 = scmp.eq.s32.totalorder %s56_s21, 0 }
   0xf   : > { %p540_p8 = por %p75_p5, %p74_p3  ;;  %p106_p10 = scmp.eq.s32.totalorder %s285_s17, 1 }
  0x10   : > { %p544_p9 = por %p100_p6, %p68_p1  ;;  %p287_p12 = scmp.ge.s32.totalorder %s473_s16, 2 }
  0x11   : > { %s549_s24 = scalar_select %p59_p7, %s461_s13, %s61_s19  }
  0x12   : > { %p551_p11 = por %p106_p10, %p74_p3  ;;  %p309_p13 = scmp.lt.s32.totalorder %s473_s16, 2 }
  0x13   : > { %s129_s26 = sand.u32 1, %s461_s13   ;;  %s289_s28 = sshll.u32 %s469_s15, 3 }
  0x14   : > { %s288_s27 = sshll.u32 %s129_s26, 3  ;;  %s138_s3 = scalar_lea.hbm %s614_s1, %s289_s28 }
  0x15   : > { %s133_s4 = scalar_lea.vmem [#allocation3], %s288_s27  ;;  %s140_s6 = sshll.u32 %s138_s3, 4  ;;  %s141_s6 = int_to_ptr.hbm [resolvable:$true] %s140_s6 }
  0x16   : > { %s142_s5 = sshll.u32 %s133_s4, 4  ;;  %p302_p0 = pnand %p309_p13, %p534_p4  ;;  %s143_s5 = int_to_ptr.vmem [resolvable:$true] %s142_s5 }
  0x17   : > { %p290_p1 = scmp.ge.s32.totalorder %s473_s16, 1  ;;  %p147_p2 = scmp.lt.s32.totalorder %s473_s16, 3 }
  0x18   : > { %s130_s7 = scalar_lea.sflag [#allocation4], %s129_s26 }
  0x19   : > { %304 = dma.hbm_to_vmem [thread:$0]  (!%p302_p0), %s141_s6, 128, %s143_s5, %s130_s7  }
  0x1a   : > { %p148_p3 = pnand %p290_p1, %p147_p2 }
  0x1b   : > { %s567_s8 = sand.u32 (!%p148_p3), 1, %s457_s12  }
  0x1c   : > { %151 = sbr.rel (%p148_p3) target bundleno = 55 (0x37), region = 28  ;;  %s291_s9 = sshll.u32 (!%p148_p3), %s567_s8, 3 }
  0x1d   : > { %s154_s10 = scalar_lea.sflag (!%p148_p3), [#allocation4], %s567_s8  ;;  %s157_s0 = scalar_lea.vmem (!%p148_p3), [#allocation3], %s291_s9 }
  0x21   : > { %444 = dma.done.wait (%p540_p8), %s154_s10, 128  }
  0x22   : > { %446 = vsyncadd (%p540_p8), %s154_s10, 4294967168  ;;  %s179_s17 = sld [smem:[#allocation2]]  ;;  %v180_v0 = vld [vmem:[%s157_s0] sm:$0xff]  ;;  %s294_s19 = sshll.u32 %s465_s14, 3 }
  0x23   : > { %v181_v2 = vmul.f32 %v180_v0, %v180_v0  ;;  %s199_s26 = scalar_lea.hbm %s615_s2, %s294_s19  ;;  %s178_s27 = scalar_lea.vmem [#allocation6], %s291_s9 }
  0x24   : > { %s201_s28 = sshll.u32 %s178_s27, 4  ;;  %s203_s29 = sshll.u32 %s199_s26, 4  ;;  %s202_s28 = int_to_ptr.vmem [resolvable:$true] %s201_s28  ;;  %s204_s29 = int_to_ptr.hbm [resolvable:$true] %s203_s29 }
  0x25   : > { %s188_s22 = scalar_lea.sflag [#allocation5], %s567_s8  ;;  %s405_s30 = sshra.s32 %s204_s29, 4  ;;  %s406_s30 = int_to_ptr.hbm [resolvable:$true] %s405_s30 }
  0x26   : > { %s407_s3 = scalar_lea.hbm %s406_s30, 8  ;;  %s411_s5 = scalar_lea.hbm %s615_s2, 16 }
  0x27   : > { %p408_p4 = scmp.ne.s32.totalorder %s406_s30, %s407_s3  ;;  %p412_p7 = scmp.lt.s32.totalorder %s406_s30, %s615_s2 }
  0x28   : > { %v182_v1 = vstv %s179_s17  ;;  %p413_p8 = scmp.lt.s32.totalorder %s411_s5, %s407_s3 }
  0x29   : > { %v183_v3 = vmul.f32 %v182_v1, %v181_v2  ;;  %p409_p5 = pnand %p408_p4, %p544_p9 }
  0x2a   : > { %p414_p10 = por %p413_p8, %p412_p7 }
  0x2b   : > { %v184_v4 = vmul.f32 1.442695, %v183_v3  ;;  %p410_p6 = pneg %p409_p5 }
  0x2d   : > { %359 = vpow2.f32 %v184_v4  ;;  %p415_p13 = pnand %p414_p10, %p410_p6 }
  0x33   : > { %v360_v5 = vpop.eup %359 }
  0x34   : > { %186 = vst [vmem:[%s178_s27] sm:$0xff] %v360_v5 }
  0x35   : > { %418 = shalt.err (!%p415_p13)
}
  0x36   : > { %299 = dma.vmem_to_hbm [thread:$0]  (%p544_p9), %s202_s28, 128, %s204_s29, %s188_s22  }
  0x37 PF: > { %s215_s8 = sand.u32 1, %s453_s11   ;;  %p306_p0 = pnand %p287_p12, %p551_p11 }
  0x38   : > { %s216_s9 = scalar_lea.sflag [#allocation5], %s215_s8 }
  0x39   : > { %p307_p1 = pneg %p306_p0 }
  0x3b   : > { %448 = dma.done.wait (%p307_p1), %s216_s9, 128  }
  0x3c   : > { %450 = vsyncadd (%p307_p1), %s216_s9, 4294967168  ;;  %s19_s16 = sadd.s32 1, %s473_s16   ;;  %s620_s11 = smov %s457_s12 }
  0x3d   : > { %p16_p2 = scmp.ge.s32.totalorder %s19_s16, 4   ;;  %s621_s12 = smov %s461_s13 }
  0x3e   : > { %s622_s13 = smov %s549_s24  ;;  %s623_s14 = smov %s469_s15 }
  0x3f   : > { %s624_s15 = smov %s626_s18  ;;  %18 = sbr.rel (!%p16_p2) target bundleno = 8 (0x8), region = 73 }
  0x44   :  { %222 = vsyncpa [#allocation4], 1 }
  0x45   :  { %224 = vsyncpa [#allocation4 + $0x1], 1 }
  0x46   :  { %225 = vsyncpa [#allocation5], 1 }
  0x47   :  { %227 = vsyncpa [#allocation5 + $0x1], 1 }

</bundles_post_ra>
